<compile_context>
chip_gen: v6e
topology: v6e:2x2x1
jax: 0.10.0
libtpu: 0.0.40
codegen_flags: <defaults>
</compile_context>

<pallas_src>
import jax
import jax.numpy as jnp
from jax import lax
from jax.experimental import pallas as pl
from jax.experimental.pallas import tpu as pltpu

LANES = 128
_TARGET_CHUNK_BYTES = 4 * 1024 * 1024   # per-DMA chunk; no VMEM used, safe on
                                        # v5e / v6e / v7x alike
_NBUF = 4                               # in-flight chunk DMAs (semaphore ring)


def _resolve_shape(numel, shape):
    """Replicate torch.Tensor.view shape resolution (supports a single -1)."""
    shape = list(shape)
    if shape.count(-1) > 1:
        raise ValueError("only one dimension can be inferred (-1)")
    if -1 in shape:
        known = 1
        for s in shape:
            if s != -1:
                known *= s
        if known == 0 or numel % known != 0:
            raise ValueError(f"cannot view {numel} elements as {shape}")
        shape[shape.index(-1)] = numel // known
    total = 1
    for s in shape:
        total *= s
    if total != numel:
        raise ValueError(f"shape {shape} is invalid for {numel} elements")
    return tuple(shape)


def _pick_chunk(lead, row_bytes, target_chunk_bytes):
    """Chunk length along the leading dim, near the byte target, preferring an
    exact divisor of `lead` so every DMA is full sized (uniform, no ragged
    tail). Falls back to the plain target (tail handled separately)."""
    target = max(1, target_chunk_bytes // row_bytes)
    if lead <= target:
        return lead
    lo = max(1, target // 2)
    for cand in range(target, lo - 1, -1):
        if lead % cand == 0:
            return cand
    return target


def _make_hbm_copy_kernel(lead, chunk, nbuf):
    """HBM->HBM chunked-DMA copy of a slab whose leading dim has `lead` rows.
    Works for 1-D (lead,) and 2-D (lead, cols) slabs: pl.ds slices the leading
    axis and keeps any trailing axis whole, so every chunk is one contiguous
    transfer."""
    nfull = lead // chunk
    tail = lead - nfull * chunk

    def kernel(x_hbm, o_hbm, sem):
        def cp(start, size, slot):
            return pltpu.make_async_copy(
                x_hbm.at[pl.ds(start, size)],
                o_hbm.at[pl.ds(start, size)],
                sem.at[slot],
            )

        # Prime up to `nbuf` chunk DMAs (static starts).
        for j in range(min(nbuf, nfull)):
            cp(j * chunk, chunk, j).start()

        # Ragged tail (if any) uses its own dedicated semaphore slot so it can
        # fly concurrently with the full-size chunks.
        if tail:
            cp(nfull * chunk, tail, nbuf).start()

        if nfull:
            def body(i, carry):
                slot = i % nbuf
                cp(i * chunk, chunk, slot).wait()

                @pl.when(i + nbuf < nfull)
                def _():
                    cp((i + nbuf) * chunk, chunk, slot).start()

                return carry

            lax.fori_loop(0, nfull, body, 0)

        if tail:
            cp(nfull * chunk, tail, nbuf).wait()

    return kernel


def reshape_view(x, shape):
    """Metadata-only reshape (no data movement) — identical to torch .view on
    contiguous tensors. This is the recommended fast path."""
    return jnp.reshape(x, _resolve_shape(x.size, shape))


def reshape_pallas_copy(x, shape, target_chunk_bytes=_TARGET_CHUNK_BYTES):
    """Materialized reshape: chunked HBM->HBM DMA copy of the flat buffer
    (no VMEM staging), then a metadata reshape to the target shape."""
    numel = x.size
    out_shape = _resolve_shape(numel, shape)
    if numel == 0:
        return jnp.reshape(x, out_shape)
    itemsize = jnp.dtype(x.dtype).itemsize

    if numel % LANES == 0:
        # 2-D slab (rows, 128): the DMA is contiguous either way, the 2-D
        # factorization is just the most conventional HBM layout.
        cols = LANES
        lead = numel // cols
        slab_shape = (lead, cols)
        row_bytes = cols * itemsize
    else:
        # Non-128-divisible: still materialize a real copy (flat 1-D slab),
        # never silently return a view.
        lead = numel
        slab_shape = (numel,)
        row_bytes = itemsize

    chunk = _pick_chunk(lead, row_bytes, target_chunk_bytes)
    slab = jnp.reshape(x, slab_shape)            # metadata only (contiguous)

    copied = pl.pallas_call(
        _make_hbm_copy_kernel(lead, chunk, _NBUF),
        out_shape=jax.ShapeDtypeStruct(slab_shape, x.dtype),
        in_specs=[pl.BlockSpec(memory_space=pl.ANY)],
        out_specs=pl.BlockSpec(memory_space=pl.ANY),
        scratch_shapes=[pltpu.SemaphoreType.DMA((_NBUF + 1,))],
        cost_estimate=pl.CostEstimate(
            flops=0,
            transcendentals=0,
            bytes_accessed=2 * numel * itemsize,
        ),
    )(slab)

    return jnp.reshape(copied, out_shape)        # metadata only


class Reshape:
    """JAX/Pallas mirror of the PyTorch Reshape module.

    Default forward is the metadata-only view (matches torch .view, costs no
    HBM traffic). Pass materialize=True to force an explicit copy through the
    HBM->HBM DMA kernel (when a freshly materialized buffer is required)."""

    def __init__(self, shape, materialize=False):
        self.shape = shape
        self.materialize = materialize

    def __call__(self, x):
        if self.materialize:
            return reshape_pallas_copy(x, self.shape)
        return reshape_view(x, self.shape)


if __name__ == "__main__":
    key = jax.random.PRNGKey(0)

    # Small NCHW input, as a conv feature map would be before flattening.
    x = jax.random.normal(key, (2, 4, 16, 16), dtype=jnp.float32)
    ref = jnp.reshape(x, (2, -1))

    # Default (view) path: pure metadata, no kernel — the recommended config.
    y_view = Reshape((2, -1))(x)
    y_view = jax.block_until_ready(y_view)
    assert y_view.shape == ref.shape and y_view.dtype == ref.dtype
    assert bool(jnp.array_equal(y_view, ref))

    # Materialized path: single-chunk HBM->HBM DMA copy.
    y_copy = Reshape((2, -1), materialize=True)(x)
    y_copy = jax.block_until_ready(y_copy)
    assert y_copy.shape == ref.shape and y_copy.dtype == ref.dtype
    assert bool(jnp.array_equal(y_copy, ref))

    # Materialized path, multi-chunk: shrink the chunk target so the semaphore
    # ring (prime / wait / refill) is exercised with several DMAs in flight.
    key2 = jax.random.PRNGKey(1)
    x2 = jax.random.normal(key2, (4, 8, 32, 32), dtype=jnp.float32)
    ref2 = jnp.reshape(x2, (4, -1))
    y2 = reshape_pallas_copy(x2, (4, -1), target_chunk_bytes=16 * 1024)
    y2 = jax.block_until_ready(y2)
    assert y2.shape == ref2.shape and y2.dtype == ref2.dtype
    assert bool(jnp.array_equal(y2, ref2))

    print("KERNEL_OK")
</pallas_src>

<mosaic_0001>
module attributes {stable_mosaic.version = 11 : i64} {
  func.func @kernel(%arg0: memref<16x128xf32, #tpu.memory_space<any>>, %arg1: memref<16x128xf32, #tpu.memory_space<any>>, %arg2: memref<5x!tpu.dma_semaphore, #tpu.memory_space<semaphore_mem>>) attributes {dimension_semantics = [], scalar_prefetch = 0 : i64, scratch_operands = 1 : i64, tpu.core_type = #tpu.core_type<tc>} {
    %c0_i32 = arith.constant 0 : i32
    %c0_i32_0 = arith.constant 0 : i32
    %c0_i32_1 = arith.constant 0 : i32
    %0 = tpu.memref_slice %arg0[%c0_i32_0, %c0_i32_1] : memref<16x128xf32, #tpu.memory_space<any>> -> memref<16x128xf32, #tpu.memory_space<any>>
    %c0_i32_2 = arith.constant 0 : i32
    %c0_i32_3 = arith.constant 0 : i32
    %1 = tpu.memref_slice %arg1[%c0_i32_2, %c0_i32_3] : memref<16x128xf32, #tpu.memory_space<any>> -> memref<16x128xf32, #tpu.memory_space<any>>
    %2 = tpu.memref_slice %arg2[%c0_i32] : memref<5x!tpu.dma_semaphore, #tpu.memory_space<semaphore_mem>> -> memref<1x!tpu.dma_semaphore, #tpu.memory_space<semaphore_mem>>
    %3 = tpu.memref_squeeze %2 : memref<1x!tpu.dma_semaphore, #tpu.memory_space<semaphore_mem>> -> memref<!tpu.dma_semaphore, #tpu.memory_space<semaphore_mem>>
    tpu.enqueue_dma source(%0 : memref<16x128xf32, #tpu.memory_space<any>>) target(%1 : memref<16x128xf32, #tpu.memory_space<any>>) target_semaphore(%3 : memref<!tpu.dma_semaphore, #tpu.memory_space<semaphore_mem>>)
    %c0_i32_4 = arith.constant 0 : i32
    %c4_i32 = arith.constant 4 : i32
    %c0_i32_5 = arith.constant 0 : i32
    %4 = arith.cmpi eq, %c4_i32, %c0_i32_5 : i32
    %c1_i32 = arith.constant 1 : i32
    %5 = arith.select %4, %c1_i32, %c4_i32 : i32
    %6 = arith.remsi %c0_i32_4, %5 : i32
    %c0_i32_6 = arith.constant 0 : i32
    %7 = arith.cmpi ne, %6, %c0_i32_6 : i32
    %c0_i32_7 = arith.constant 0 : i32
    %8 = arith.cmpi slt, %6, %c0_i32_7 : i32
    %c0_i32_8 = arith.constant 0 : i32
    %9 = arith.cmpi slt, %5, %c0_i32_8 : i32
    %10 = arith.xori %8, %9 : i1
    %11 = arith.andi %10, %7 : i1
    %12 = arith.addi %6, %5 : i32
    %13 = arith.select %11, %12, %6 : i32
    %c16_i32 = arith.constant 16 : i32
    %14 = arith.muli %c0_i32_4, %c16_i32 : i32
    %c0_i32_9 = arith.constant 0 : i32
    %15 = tpu.memref_slice %arg0[%14, %c0_i32_9] : memref<16x128xf32, #tpu.memory_space<any>> -> memref<16x128xf32, #tpu.memory_space<any>>
    %c0_i32_10 = arith.constant 0 : i32
    %16 = tpu.memref_slice %arg1[%14, %c0_i32_10] : memref<16x128xf32, #tpu.memory_space<any>> -> memref<16x128xf32, #tpu.memory_space<any>>
    %17 = tpu.memref_slice %arg2[%13] : memref<5x!tpu.dma_semaphore, #tpu.memory_space<semaphore_mem>> -> memref<1x!tpu.dma_semaphore, #tpu.memory_space<semaphore_mem>>
    %18 = tpu.memref_squeeze %17 : memref<1x!tpu.dma_semaphore, #tpu.memory_space<semaphore_mem>> -> memref<!tpu.dma_semaphore, #tpu.memory_space<semaphore_mem>>
    tpu.wait_dma2 semaphore(%18 : memref<!tpu.dma_semaphore, #tpu.memory_space<semaphore_mem>>) src(%15 : memref<16x128xf32, #tpu.memory_space<any>>) dst(%16 : memref<16x128xf32, #tpu.memory_space<any>>)
    %c4_i32_11 = arith.constant 4 : i32
    %19 = arith.addi %c0_i32_4, %c4_i32_11 : i32
    %c1_i32_12 = arith.constant 1 : i32
    %20 = arith.cmpi slt, %19, %c1_i32_12 : i32
    %21 = arith.extui %20 : i1 to i32
    %c0_i32_13 = arith.constant 0 : i32
    %22 = arith.cmpi ne, %21, %c0_i32_13 : i32
    scf.if %22 {
      %c4_i32_15 = arith.constant 4 : i32
      %23 = arith.addi %c0_i32_4, %c4_i32_15 : i32
      %c16_i32_16 = arith.constant 16 : i32
      %24 = arith.muli %23, %c16_i32_16 : i32
      %c0_i32_17 = arith.constant 0 : i32
      %25 = tpu.memref_slice %arg0[%24, %c0_i32_17] : memref<16x128xf32, #tpu.memory_space<any>> -> memref<16x128xf32, #tpu.memory_space<any>>
      %c0_i32_18 = arith.constant 0 : i32
      %26 = tpu.memref_slice %arg1[%24, %c0_i32_18] : memref<16x128xf32, #tpu.memory_space<any>> -> memref<16x128xf32, #tpu.memory_space<any>>
      %27 = tpu.memref_slice %arg2[%13] : memref<5x!tpu.dma_semaphore, #tpu.memory_space<semaphore_mem>> -> memref<1x!tpu.dma_semaphore, #tpu.memory_space<semaphore_mem>>
      %28 = tpu.memref_squeeze %27 : memref<1x!tpu.dma_semaphore, #tpu.memory_space<semaphore_mem>> -> memref<!tpu.dma_semaphore, #tpu.memory_space<semaphore_mem>>
      tpu.enqueue_dma source(%25 : memref<16x128xf32, #tpu.memory_space<any>>) target(%26 : memref<16x128xf32, #tpu.memory_space<any>>) target_semaphore(%28 : memref<!tpu.dma_semaphore, #tpu.memory_space<semaphore_mem>>)
    } else {
    }
    %c1_i32_14 = arith.constant 1 : i32
    return
  }
}

</mosaic_0001>

<bundles_post_ra>
// kernel: tpu_custom_call.1
= control target key start
LH: loop header
LB: loop body
LE: loop exit
PB: predicated region body
PF: predicated region fallthrough
CT: control target
= control target key end

     0   :  { %s60_s6 = smov [#allocation2]   ;;  %s61_s7 = smov 131072   ;;  %s79_s0 = inlined_call_operand.hbm [shape: f32[16,128], index: 0, kind: input, shape index: {}]   ;;  %s80_s1 = inlined_call_operand.hbm [shape: f32[16,128], index: 1, kind: output, shape index: {}]  }
   0x1   :  { %s62_s8 = smov 0  }
   0x2   :  { %12 = dma.general %s79_s0, 256, %s80_s1, %s60_s6, %s61_s7, [#allocation4], %s62_s8, 0  }
   0x3   :  { %58 = dma.done.wait [#allocation2], 256 }
   0x4   :  { %59 = vsyncadd [#allocation2], 4294967040 }
   0x5   :  { %16 = vsyncmov [#allocation2] }
   0x8   :  { %s17_s13 = vpop.sfrf %16 }
   0x9   :  { %p50_p0 = scmp.ne.s32.totalorder %s17_s13, 0 }
   0xb   :  { %21 = shalt.err (%p50_p0)  }
   0xc   :  { %23 = vsyncmov [#allocation2 + $0x1] }
   0xf   :  { %s24_s14 = vpop.sfrf %23 }
  0x10   :  { %p51_p1 = scmp.ne.s32.totalorder %s24_s14, 0 }
  0x12   :  { %28 = shalt.err (%p51_p1)  }
  0x13   :  { %30 = vsyncmov [#allocation2 + $0x2] }
  0x16   :  { %s31_s15 = vpop.sfrf %30 }
  0x17   :  { %p52_p2 = scmp.ne.s32.totalorder %s31_s15, 0 }
  0x19   :  { %35 = shalt.err (%p52_p2)  }
  0x1a   :  { %37 = vsyncmov [#allocation2 + $0x3] }
  0x1d   :  { %s38_s16 = vpop.sfrf %37 }
  0x1e   :  { %p53_p3 = scmp.ne.s32.totalorder %s38_s16, 0 }
  0x20   :  { %42 = shalt.err (%p53_p3)  }
  0x21   :  { %44 = vsyncmov [#allocation2 + $0x4] }
  0x24   :  { %s45_s0 = vpop.sfrf %44 }
  0x25   :  { %p54_p4 = scmp.ne.s32.totalorder %s45_s0, 0 }
  0x27   :  { %49 = shalt.err (%p54_p4)  }

</bundles_post_ra>
